<compile_context>
chip_gen: v5e
topology: v5e:2x2
jax: 0.10.0
libtpu: 0.0.40
codegen_flags: <defaults>
</compile_context>

<pallas_src>
import functools
import numpy as np

import jax
import jax.numpy as jnp
from jax import lax
from jax.experimental import pallas as pl
from jax.experimental.pallas import tpu as pltpu


def _round_up(x, m):
    return ((x + m - 1) // m) * m


def _im2col_T(x, k, stride):
    """x: (N, C, H, W) -> patches (N, C*k*k, Ho*Wo), K ordered (C, kh, kw)."""
    N, C, H, W = x.shape
    Ho = (H - k) // stride + 1
    Wo = (W - k) // stride + 1
    cols = []
    for i in range(k):
        for j in range(k):
            cols.append(x[:, :, i:i + stride * Ho:stride, j:j + stride * Wo:stride])
    p = jnp.stack(cols, axis=2)                       # (N, C, k*k, Ho, Wo)
    return p.reshape(N, C * k * k, Ho * Wo), Ho, Wo


def _ocdtd_kernel(xT_ref, w_ref, ones_ref, c0_ref, c1_ref, out_ref, *,
                  q, coef, ts, s_valid):
    """Grid = (image n, spatial tile t).  Hot tensors are (Cp, TS): channels
    on sublanes, spatial positions on lanes, so softmin is a cheap 8-sublane
    reduce and exp only touches real channels."""
    t = pl.program_id(1)

    xT = xT_ref[...]                                            # (Kp, TS) bf16
    # conv(x, w') on the MXU (bf16 in, f32 accumulate).
    lin = jnp.dot(w_ref[...], xT,
                  preferred_element_type=jnp.float32)           # (Cp, TS)
    # conv(x**2, ones') also on the MXU -> s2 arrives broadcast over channels.
    s2 = jnp.dot(ones_ref[...], xT * xT,
                 preferred_element_type=jnp.float32)            # (Cp, TS)

    if q == 2.0:
        # coef, bias, +0.01, log(alpha) all folded on the host:
        # neg_h = -(coef*(||p-c||^2 + 0.01) - log(alpha)) directly.
        neg_h = lin + s2 + c0_ref[...]
    else:
        # d^q = exp(0.5*q*log(d^2)); one log + one exp, no sqrt / float pow.
        d2 = jnp.maximum(lin + s2 + c0_ref[...], 1e-30)
        neg_h = c1_ref[...] - coef * jnp.exp((0.5 * q) * jnp.log(d2))

    # soft-min over channels == -logsumexp(-h) over the sublane axis.
    # Padded channels carry a -1e9 constant, so exp underflows to exactly 0.
    m = jnp.max(neg_h, axis=0, keepdims=True)                   # (1, TS)
    softmin = -(m + jnp.log(jnp.sum(jnp.exp(neg_h - m), axis=0, keepdims=True)))

    last = pl.num_programs(1) - 1

    # Per-(image, tile) spatial partial sum -> one lane-dense (8,128) block.
    @pl.when(t != last)
    def _():
        out_ref[...] = jnp.broadcast_to(
            jnp.sum(softmin, axis=-1, keepdims=True), out_ref.shape)

    # Only the last spatial tile contains padded positions -> mask only there.
    @pl.when(t == last)
    def _():
        col = t * ts + lax.broadcasted_iota(jnp.int32, softmin.shape, 1)
        sm = jnp.where(col < s_valid, softmin, 0.0)
        out_ref[...] = jnp.broadcast_to(
            jnp.sum(sm, axis=-1, keepdims=True), out_ref.shape)


def conv_ocdtd_forward(x, svs, alpha, q, sigma, stride=1):
    """Pallas implementation of ConvOCDTD.forward.

    x:     (N, Cin, H, W)  float32, NCHW (PyTorch convention)
    svs:   (Cout, Cin, k, k) float32 (centroids / support vectors)
    alpha: (Cout,) float32, positive
    returns (N, 1, 1, 1) float32
    """
    N, Cin, H, W = x.shape
    Cout, _, k, _ = svs.shape
    K = Cin * k * k
    q = float(q)
    sigma = float(sigma)
    coef = 1.0 / (q * sigma ** q)

    # ConvDist.set_params
    weight = (-2.0 * svs).reshape(Cout, K)            # conv weight (-2 * centroid)
    bias = jnp.sum(svs ** 2, axis=(1, 2, 3))          # ||centroid||^2
    log_alpha = jnp.log(alpha)

    # TODO(synk): fuse im2col into the kernel (stream x from HBM with manual
    # async copies over overlapping row bands) to cut the dominant HBM stream
    # by ~k^2; kept host-side here, but in bf16 and already in (K, S) layout.
    patches_T, Ho, Wo = _im2col_T(x.astype(jnp.bfloat16), k, stride)   # (N,K,S)
    S = Ho * Wo

    Kp = _round_up(K, 8)            # contraction dim -> sublanes of patch tile
    Cp = _round_up(Cout, 8)         # channels -> sublanes of the hot tensors
    # Large spatial tiles amortize the ~0.35us/step overhead; cap the (Kp,TS)
    # bf16 patch buffer at ~4 MiB so the double-buffered inputs + f32
    # intermediates stay well inside v7x's 64 MiB physical VMEM.
    max_ts = max(128, ((4 * 1024 * 1024) // (2 * Kp)) // 128 * 128)
    TS = min(2048, max_ts, _round_up(S, 128))
    S_pad = _round_up(S, TS)
    n_t = S_pad // TS

    pT = (jnp.zeros((N, Kp, S_pad), jnp.bfloat16)
          .at[:, :K, :S].set(patches_T)
          .reshape(N * Kp, S_pad))

    # Fold every affine constant on the host so the q==2 inner loop emits
    # neg_h with two dots and two adds; general q gets one exp/log pair.
    if q == 2.0:
        w_host = (-coef) * weight                      # -coef * conv-weight
        ones_host = jnp.full((Cout, K), -coef, jnp.float32)
        c0_host = log_alpha - coef * (bias + 0.01)     # additive term of -h
        c1_host = jnp.zeros((Cout,), jnp.float32)      # unused on this path
        c0_fill = -1e9                                 # padded chan -> exp -> 0
    else:
        w_host = weight
        ones_host = jnp.ones((Cout, K), jnp.float32)
        c0_host = bias + 0.01                          # added to d^2
        c1_host = log_alpha
        c0_fill = 0.01                                 # keeps padded d^2 > 0

    w_p = jnp.zeros((Cp, Kp), jnp.bfloat16).at[:Cout, :K].set(
        w_host.astype(jnp.bfloat16))
    ones_p = jnp.zeros((Cp, Kp), jnp.bfloat16).at[:Cout, :K].set(
        ones_host.astype(jnp.bfloat16))
    c0_p = jnp.full((Cp, 1), c0_fill, jnp.float32).at[:Cout, 0].set(c0_host)
    c1_p = jnp.full((Cp, 1), -1e9, jnp.float32).at[:Cout, 0].set(c1_host)

    kernel = functools.partial(_ocdtd_kernel, q=q, coef=coef, ts=TS, s_valid=S)

    out = pl.pallas_call(
        kernel,
        out_shape=jax.ShapeDtypeStruct((N * n_t * 8, 128), jnp.float32),
        grid_spec=pltpu.PrefetchScalarGridSpec(
            num_scalar_prefetch=0,
            grid=(N, n_t),
            in_specs=[
                pl.BlockSpec((Kp, TS), lambda n, t: (n, t)),      # patches^T
                pl.BlockSpec((Cp, Kp), lambda n, t: (0, 0)),      # folded weight
                pl.BlockSpec((Cp, Kp), lambda n, t: (0, 0)),      # folded ones
                pl.BlockSpec((Cp, 1), lambda n, t: (0, 0)),       # folded consts
                pl.BlockSpec((Cp, 1), lambda n, t: (0, 0)),       # log(alpha)
            ],
            out_specs=pl.BlockSpec((8, 128), lambda n, t: (n * n_t + t, 0)),
        ),
        compiler_params=pltpu.CompilerParams(
            # Per-tile partials -> no cross-tile accumulator, so both grid
            # axes are parallel (keeps v7x's two TensorCores busy at N == 1).
            dimension_semantics=("parallel", "parallel"),
            vmem_limit_bytes=32 * 1024 * 1024),
    )(pT, w_p, ones_p, c0_p, c1_p)

    # SoftMinMaxPool.sum finishes on the host: a tiny (N, n_t) reduction.
    per_image = out.reshape(N, n_t, 8, 128)[:, :, 0, 0].sum(axis=1)
    return per_image.reshape(N, 1, 1, 1)


def _reference_forward(x, svs, alpha, q, sigma, stride=1):
    """Pure-JAX reference mirroring the PyTorch module."""
    Cout, Cin, k, _ = svs.shape
    w = -2.0 * svs
    b = jnp.sum(svs ** 2, axis=(1, 2, 3))
    ones = jnp.ones((1, Cin, k, k), jnp.float32)
    strides = (stride, stride)
    c1 = lax.conv_general_dilated(x ** 2, ones, strides, 'VALID',
                                  precision=lax.Precision.HIGHEST)
    c2 = lax.conv_general_dilated(x, w, strides, 'VALID',
                                  precision=lax.Precision.HIGHEST)
    d = jnp.sqrt(c1 + c2 + b[None, :, None, None] + 0.01)
    h = 1.0 / (q * sigma ** q) * d ** q - jnp.log(alpha)[None, :, None, None]
    ok = -jax.scipy.special.logsumexp(-h, axis=1, keepdims=True)
    return jnp.sum(ok, axis=(2, 3), keepdims=True)


if __name__ == "__main__":
    key = jax.random.PRNGKey(0)
    kx, ks, ka = jax.random.split(key, 3)

    # Small synthetic OC-SVM parameters (deterministic, no checkpoint).
    N, Cin, H, W = 2, 4, 16, 16
    k_size, Cout = 4, 8            # ocsvm.svs shape = (Cout, Cin*k*k) = (8, 64)
    q, sigma, stride = 2.0, 1.5, 1

    x = jax.random.normal(kx, (N, Cin, H, W), jnp.float32)
    svs = 0.3 * jax.random.normal(ks, (Cout, Cin, k_size, k_size), jnp.float32)
    alpha = jax.random.uniform(ka, (Cout,), jnp.float32, minval=0.1, maxval=1.0)

    out = conv_ocdtd_forward(x, svs, alpha, q, sigma, stride)
    out = jax.block_until_ready(out)

    ref = _reference_forward(x, svs, alpha, q, sigma, stride)
    np.testing.assert_allclose(np.asarray(out), np.asarray(ref),
                               rtol=5e-2, atol=5e-2)
    assert out.shape == (N, 1, 1, 1)

    print("KERNEL_OK")
</pallas_src>

<mosaic_0001>
module attributes {stable_mosaic.version = 11 : i64} {
  func.func @_ocdtd_kernel(%arg0: i32, %arg1: i32, %arg2: memref<64x256xbf16, #tpu.memory_space<vmem>>, %arg3: memref<8x64xbf16, #tpu.memory_space<vmem>>, %arg4: memref<8x64xbf16, #tpu.memory_space<vmem>>, %arg5: memref<8x1xf32, #tpu.memory_space<vmem>>, %arg6: memref<8x1xf32, #tpu.memory_space<vmem>>, %arg7: memref<8x128xf32, #tpu.memory_space<vmem>>) attributes {dimension_semantics = [#tpu.dimension_semantics<parallel>, #tpu.dimension_semantics<parallel>], iteration_bounds = array<i64: 2, 1>, scalar_prefetch = 0 : i64, scratch_operands = 0 : i64, tpu.core_type = #tpu.core_type<tc>, window_params = [{transform_indices = @transform_0, window_bounds = array<i64: 64, 256>}, {pipeline_mode = #tpu.pipeline_mode<synchronous>, transform_indices = @transform_1, window_bounds = array<i64: 8, 64>}, {pipeline_mode = #tpu.pipeline_mode<synchronous>, transform_indices = @transform_2, window_bounds = array<i64: 8, 64>}, {pipeline_mode = #tpu.pipeline_mode<synchronous>, transform_indices = @transform_3, window_bounds = array<i64: 8, 1>}, {pipeline_mode = #tpu.pipeline_mode<synchronous>, transform_indices = @transform_4, window_bounds = array<i64: 8, 1>}, {transform_indices = @transform_5, window_bounds = array<i64: 8, 128>}]} {
    %c0 = arith.constant 0 : index
    %c0_0 = arith.constant 0 : index
    %0 = vector.load %arg2[%c0, %c0_0] : memref<64x256xbf16, #tpu.memory_space<vmem>>, vector<64x256xbf16>
    %c0_1 = arith.constant 0 : index
    %c0_2 = arith.constant 0 : index
    %1 = vector.load %arg3[%c0_1, %c0_2] : memref<8x64xbf16, #tpu.memory_space<vmem>>, vector<8x64xbf16>
    %cst = arith.constant dense<0.000000e+00> : vector<8x256xf32>
    %2 = tpu.matmul %1, %0, %cst {dimension_numbers = #tpu.dot_dimension_numbers<[1], [0], [0], [1], [0, 0, 1, 1], [], []>} : vector<8x64xbf16>, vector<64x256xbf16>, vector<8x256xf32> -> vector<8x256xf32>
    %c0_3 = arith.constant 0 : index
    %c0_4 = arith.constant 0 : index
    %3 = vector.load %arg4[%c0_3, %c0_4] : memref<8x64xbf16, #tpu.memory_space<vmem>>, vector<8x64xbf16>
    %4 = arith.mulf %0, %0 : vector<64x256xbf16>
    %cst_5 = arith.constant dense<0.000000e+00> : vector<8x256xf32>
    %5 = tpu.matmul %3, %4, %cst_5 {dimension_numbers = #tpu.dot_dimension_numbers<[1], [0], [0], [1], [0, 0, 1, 1], [], []>} : vector<8x64xbf16>, vector<64x256xbf16>, vector<8x256xf32> -> vector<8x256xf32>
    %6 = arith.addf %2, %5 : vector<8x256xf32>
    %c0_6 = arith.constant 0 : index
    %c0_7 = arith.constant 0 : index
    %7 = vector.load %arg5[%c0_6, %c0_7] : memref<8x1xf32, #tpu.memory_space<vmem>>, vector<8x1xf32>
    %8 = vector.broadcast %7 : vector<8x1xf32> to vector<8x256xf32>
    %9 = arith.addf %6, %8 : vector<8x256xf32>
    %cst_8 = arith.constant dense<0xFF800000> : vector<256xf32>
    %10 = vector.multi_reduction <maximumf>, %9, %cst_8 [0] : vector<8x256xf32> to vector<256xf32>
    %11 = vector.shape_cast %10 : vector<256xf32> to vector<1x256xf32>
    %12 = vector.broadcast %11 : vector<1x256xf32> to vector<8x256xf32>
    %13 = arith.subf %9, %12 : vector<8x256xf32>
    %14 = math.exp %13 : vector<8x256xf32>
    %cst_9 = arith.constant dense<0.000000e+00> : vector<256xf32>
    %15 = vector.multi_reduction <add>, %14, %cst_9 [0] : vector<8x256xf32> to vector<256xf32>
    %16 = vector.shape_cast %15 : vector<256xf32> to vector<1x256xf32>
    %17 = math.log %16 : vector<1x256xf32>
    %18 = arith.addf %11, %17 : vector<1x256xf32>
    %cst_10 = arith.constant 0.000000e+00 : f32
    %19 = vector.broadcast %cst_10 : f32 to vector<1x256xf32>
    %20 = arith.subf %19, %18 : vector<1x256xf32>
    %c0_i32 = arith.constant 0 : i32
    %21 = arith.cmpi ne, %arg1, %c0_i32 : i32
    %22 = arith.extui %21 : i1 to i32
    %c0_i32_11 = arith.constant 0 : i32
    %23 = arith.cmpi ne, %22, %c0_i32_11 : i32
    scf.if %23 {
      %cst_14 = arith.constant dense<0.000000e+00> : vector<1xf32>
      %27 = vector.multi_reduction <add>, %20, %cst_14 [1] : vector<1x256xf32> to vector<1xf32>
      %28 = vector.shape_cast %27 : vector<1xf32> to vector<1x1xf32>
      %29 = vector.shape_cast %28 : vector<1x1xf32> to vector<1x1xf32>
      %30 = vector.broadcast %29 : vector<1x1xf32> to vector<8x128xf32>
      %c0_15 = arith.constant 0 : index
      %c0_16 = arith.constant 0 : index
      %31 = vector.load %arg7[%c0_15, %c0_16] : memref<8x128xf32, #tpu.memory_space<vmem>>, vector<8x128xf32>
      tpu.vector_store %arg7[%c0_15, %c0_16], %30 {strides = array<i32>} : memref<8x128xf32, #tpu.memory_space<vmem>>, vector<8x128xf32>,
    } else {
    }
    %c0_i32_12 = arith.constant 0 : i32
    %24 = arith.cmpi eq, %arg1, %c0_i32_12 : i32
    %25 = arith.extui %24 : i1 to i32
    %c0_i32_13 = arith.constant 0 : i32
    %26 = arith.cmpi ne, %25, %c0_i32_13 : i32
    scf.if %26 {
      %c256_i32 = arith.constant 256 : i32
      %27 = arith.muli %arg1, %c256_i32 : i32
      %28 = tpu.iota {dimensions = array<i32: 1>} : vector<1x256xi32>
      %29 = vector.broadcast %27 : i32 to vector<1x256xi32>
      %30 = arith.addi %29, %28 : vector<1x256xi32>
      %c169_i32 = arith.constant 169 : i32
      %31 = vector.broadcast %c169_i32 : i32 to vector<1x256xi32>
      %32 = arith.cmpi slt, %30, %31 : vector<1x256xi32>
      %cst_14 = arith.constant 0.000000e+00 : f32
      %33 = vector.broadcast %cst_14 : f32 to vector<1x256xf32>
      %34 = arith.select %32, %20, %33 : vector<1x256xi1>, vector<1x256xf32>
      %cst_15 = arith.constant dense<0.000000e+00> : vector<1xf32>
      %35 = vector.multi_reduction <add>, %34, %cst_15 [1] : vector<1x256xf32> to vector<1xf32>
      %36 = vector.shape_cast %35 : vector<1xf32> to vector<1x1xf32>
      %37 = vector.shape_cast %36 : vector<1x1xf32> to vector<1x1xf32>
      %38 = vector.broadcast %37 : vector<1x1xf32> to vector<8x128xf32>
      %c0_16 = arith.constant 0 : index
      %c0_17 = arith.constant 0 : index
      %39 = vector.load %arg7[%c0_16, %c0_17] : memref<8x128xf32, #tpu.memory_space<vmem>>, vector<8x128xf32>
      tpu.vector_store %arg7[%c0_16, %c0_17], %38 {strides = array<i32>} : memref<8x128xf32, #tpu.memory_space<vmem>>, vector<8x128xf32>,
    } else {
    }
    return
  }
  func.func @transform_0(%arg0: i32, %arg1: i32) -> (i32, i32) {
    %c0_i32 = arith.constant 0 : i32
    return %arg0, %arg1 : i32, i32
  }
  func.func @transform_1(%arg0: i32, %arg1: i32) -> (i32, i32) {
    %c0_i32 = arith.constant 0 : i32
    %c0_i32_0 = arith.constant 0 : i32
    %c0_i32_1 = arith.constant 0 : i32
    return %c0_i32, %c0_i32_0 : i32, i32
  }
  func.func @transform_2(%arg0: i32, %arg1: i32) -> (i32, i32) {
    %c0_i32 = arith.constant 0 : i32
    %c0_i32_0 = arith.constant 0 : i32
    %c0_i32_1 = arith.constant 0 : i32
    return %c0_i32, %c0_i32_0 : i32, i32
  }
  func.func @transform_3(%arg0: i32, %arg1: i32) -> (i32, i32) {
    %c0_i32 = arith.constant 0 : i32
    %c0_i32_0 = arith.constant 0 : i32
    %c0_i32_1 = arith.constant 0 : i32
    return %c0_i32, %c0_i32_0 : i32, i32
  }
  func.func @transform_4(%arg0: i32, %arg1: i32) -> (i32, i32) {
    %c0_i32 = arith.constant 0 : i32
    %c0_i32_0 = arith.constant 0 : i32
    %c0_i32_1 = arith.constant 0 : i32
    return %c0_i32, %c0_i32_0 : i32, i32
  }
  func.func @transform_5(%arg0: i32, %arg1: i32) -> (i32, i32) {
    %c1_i32 = arith.constant 1 : i32
    %0 = arith.muli %arg0, %c1_i32 : i32
    %1 = arith.addi %0, %arg1 : i32
    %c0_i32 = arith.constant 0 : i32
    %c0_i32_0 = arith.constant 0 : i32
    return %1, %c0_i32 : i32, i32
  }
}

</mosaic_0001>

<bundles_post_ra>
// kernel: tpu_custom_call.1
= control target key start
LH: loop header
LB: loop body
LE: loop exit
PB: predicated region body
PF: predicated region fallthrough
CT: control target
= control target key end

     0   :  { %10 = vsyncpa [#allocation3], 0  ;;  %s1027_s0 = inlined_call_operand.hbm [shape: bf16[128,256], index: 0, kind: input, shape index: {}]   ;;  %s1028_s1 = inlined_call_operand.vmem [shape: bf16[8,64], index: 1, kind: input, shape index: {}]   ;;  %s1029_s2 = inlined_call_operand.vmem [shape: bf16[8,64], index: 2, kind: input, shape index: {}]   ;;  %s1030_s3 = inlined_call_operand.vmem [shape: f32[8,1], index: 3, kind: input, shape index: {}]   ;;  %s1031_s4 = inlined_call_operand.vmem [shape: f32[8,1], index: 4, kind: input, shape index: {}]   ;;  %s1032_s5 = inlined_call_operand.hbm [shape: f32[16,128], index: 5, kind: output, shape index: {}]  }
   0x1   :  { %12 = vsyncpa [#allocation3 + $0x1], 0 }
   0x2   :  { %13 = vsyncpa [#allocation4], 0 }
   0x3   :  { %15 = vsyncpa [#allocation4 + $0x1], 0  ;;  %s871_s18 = smov 0   ;;  %s873_s19 = smov 0  }
   0x4   :  { %s875_s20 = smov 0   ;;  %s877_s21 = smov 0  }
   0x5   :  { %s879_s22 = smov 0   ;;  %s881_s23 = smov 0  }
   0x6 LB: > { %s589_s4 = sadd.s32 4294967295, %s836_s23   ;;  %s590_s24 = sadd.s32 4294967294, %s836_s23   ;;  %s836_s23 = sphi %s881_s23, %s21_s23   ;;  %s832_s22 = sphi %s879_s22, %s1041_s22   ;;  %s828_s21 = sphi %s877_s21, %s1040_s21   ;;  %s824_s20 = sphi %s875_s20, %s1039_s20   ;;  %s820_s19 = sphi %s873_s19, %s1038_s19   ;;  %s816_s18 = sphi %s871_s18, %s1037_s18  }
   0x7   : > { %s33_s25 = sadd.s32 1, %s832_s22  ;;  %s42_s26 = sadd.s32 1, %s824_s20 }
   0x8   : > { %p35_p0 = scmp.ge.s32.totalorder %s33_s25, 2  ;;  %p49_p1 = scmp.ne.s32.totalorder %s824_s20, %s820_s19 }
   0x9   : > { %p50_p2 = scmp.eq.s32.totalorder %s836_s23, 0  ;;  %p55_p3 = scmp.ne.s32.totalorder %s820_s19, %s816_s18 }
   0xa   : > { %s1043_s25 = smov (%p35_p0, %s33_s25), 0  ;;  %p56_p5 = scmp.eq.s32.totalorder %s589_s4, 0 }
   0xb   : > { %p912_p4 = por %p50_p2, %p49_p1  ;;  %s37_s28 = ssub.s32 %s832_s22, %s1043_s25 }
   0xc   : > { %p165_p6 = scmp.eq.s32.totalorder %s589_s4, 1  ;;  %p40_p7 = scmp.eq.s32.totalorder %s37_s28, 0 }
   0xd   : > { %p918_p8 = por %p56_p5, %p55_p3  ;;  %p171_p10 = scmp.eq.s32.totalorder %s590_s24, 1 }
   0xe   : > { %p922_p9 = por %p165_p6, %p49_p1  ;;  %p592_p12 = scmp.ge.s32.totalorder %s836_s23, 2 }
   0xf   : > { %s927_s6 = scalar_select %p40_p7, %s824_s20, %s42_s26  }
  0x10   : > { %p929_p11 = por %p171_p10, %p55_p3  ;;  %p662_p13 = scmp.lt.s32.totalorder %s836_s23, 2 }
  0x11   : > { %s203_s8 = sand.u32 1, %s824_s20   ;;  %s641_s10 = sshll.u32 %s832_s22, 6 }
  0x12   : > { %s593_s9 = sshll.u32 %s203_s8, 6  ;;  %s215_s13 = scalar_lea.hbm %s1027_s0, %s641_s10 }
  0x13   : > { %s207_s14 = scalar_lea.vmem [#allocation2], %s593_s9  ;;  %s216_s16 = sshll.u32 %s215_s13, 4  ;;  %s217_s16 = int_to_ptr.hbm [resolvable:$true] %s216_s16 }
  0x14   : > { %s218_s15 = sshll.u32 %s207_s14, 4  ;;  %p655_p0 = pnand %p662_p13, %p912_p4  ;;  %s219_s15 = int_to_ptr.vmem [resolvable:$true] %s218_s15 }
  0x15   : > { %p597_p1 = scmp.ge.s32.totalorder %s836_s23, 1  ;;  %s204_s17 = scalar_lea.sflag [#allocation3], %s203_s8 }
  0x16   : > { %s838_s4 = smov 128   ;;  %s839_s24 = smov 8  }
  0x17   : > { %657 = dma.hbm_to_vmem [thread:$0]  (!%p655_p0), %s217_s16, 1024, %s219_s15, %s204_s17, %s838_s4, %s838_s4, %s839_s24  }
  0x18   : > { %p226_p2 = scmp.lt.s32.totalorder %s836_s23, 3 }
  0x1a   : > { %p227_p3 = pnand %p597_p1, %p226_p2 }
  0x1b   : > { %s945_s26 = sand.u32 (!%p227_p3), 1, %s820_s19  }
  0x1c   : > { %230 = sbr.rel (%p227_p3) target bundleno = 360 (0x168), region = 40  ;;  %s598_s28 = sshll.u32 (!%p227_p3), %s945_s26, 6 }
  0x1d   : > { %s233_s9 = scalar_lea.sflag (!%p227_p3), [#allocation3], %s945_s26  ;;  %s949_s10 = scalar_lea.vmem (!%p227_p3), [#allocation2], %s598_s28 }
  0x21   : > { %807 = dma.done.wait (%p918_p8), %s233_s9, 1024  }
  0x22   : > { %809 = vsyncadd (%p918_p8), %s233_s9, 4294966272  ;;  %v840_v0 = vmov 0   ;;  %v628_v1 = vld [vmem:[%s949_s10 + $0x30] sm:$0xf]  ;;  %v649_v2 = vld [vmem:[%s949_s10 + $0x34] sm:$0xf0] }
  0x23   : > { %715 = vset.pattern.permute.xlu0 %v840_v0  ;;  %v648_v3 = vld [vmem:[%s949_s10 + $0x34] sm:$0xf]  ;;  %v629_v4 = vor.u32 %v649_v2, %v628_v1  ;;  %v630_v5 = vld [vmem:[%s949_s10 + $0x38] sm:$0xf0]  ;;  %v620_v12 = vld [vmem:[%s949_s10 + $0x20] sm:$0xf] }
  0x24   : > { %v274_v6 = vld [vmem:[%s949_s10 + $0x30] sm:$0xff]  ;;  %v275_v7 = vld [vmem:[%s949_s10 + $0x38] sm:$0xff]  ;;  %v633_v8 = vor.u32 %v648_v3, %v630_v5  ;;  %v647_v13 = vld [vmem:[%s949_s10 + $0x24] sm:$0xf0]  ;;  %vm318_vm0 = vcmask 523264   ;;  %s599_s14 = sshll.u32 %s945_s26, 3 }
  0x25   : > { %v290_v9 = vunpack.c.l.bf16 %v274_v6  ;;  %v292_v10 = vunpack.c.l.bf16 %v275_v7  ;;  %v291_v11 = vunpack.c.h.bf16 %v274_v6  ;;  %v646_v14 = vld [vmem:[%s949_s10 + $0x24] sm:$0xf]  ;;  %395 = vmatpush.bf16.msra.mxu2 %v629_v4  ;;  %v293_v15 = vunpack.c.h.bf16 %v275_v7  ;;  %v622_v17 = vld [vmem:[%s949_s10 + $0x28] sm:$0xf0]  ;;  %v612_v24 = vld [vmem:[%s949_s10 + $0x10] sm:$0xf] }
  0x26   : > { %v621_v16 = vor.u32 %v647_v13, %v620_v12  ;;  %v272_v18 = vld [vmem:[%s949_s10 + $0x20] sm:$0xff]  ;;  %v273_v19 = vld [vmem:[%s949_s10 + $0x28] sm:$0xff]  ;;  %408 = vmatpush.bf16.msra.mxu3 %v633_v8  ;;  %v625_v23 = vor.u32 %v646_v14, %v622_v17  ;;  %v645_v25 = vld [vmem:[%s949_s10 + $0x14] sm:$0xf0]  ;;  %s637_s15 = sshll.u32 %s828_s21, 3  ;;  %s263_s24 = scalar_lea.vmem [#allocation5], %s599_s14 }
  0x27   : > { %v306_v20 = vmul.f32 %v290_v9, %v290_v9  ;;  %v308_v21 = vmul.f32 %v292_v10, %v292_v10  ;;  %v307_v22 = vmul.f32 %v291_v11, %v291_v11  ;;  %v644_v26 = vld [vmem:[%s949_s10 + $0x14] sm:$0xf]  ;;  %v309_v27 = vmul.f32 %v293_v15, %v293_v15  ;;  %v614_v31 = vld [vmem:[%s949_s10 + $0x18] sm:$0xf0]  ;;  %v604_v38 = vld [vmem:[%s949_s10] sm:$0xf]  ;;  %s502_s4 = scalar_lea.hbm %s1032_s5, %s637_s15 }
  0x28   : > { %v286_v28 = vunpack.c.l.bf16 %v272_v18  ;;  %v288_v29 = vunpack.c.l.bf16 %v273_v19  ;;  %v287_v30 = vunpack.c.h.bf16 %v272_v18  ;;  %v270_v32 = vld [vmem:[%s949_s10 + $0x10] sm:$0xff]  ;;  %v271_v33 = vld [vmem:[%s949_s10 + $0x18] sm:$0xff]  ;;  %v289_v35 = vunpack.c.h.bf16 %v273_v19  ;;  %v643_v39 = vld [vmem:[%s949_s10 + $0x4] sm:$0xf0]  ;;  %s504_s28 = sshll.u32 %s263_s24, 4  ;;  %s506_s9 = sshll.u32 %s502_s4, 4  ;;  %s505_s28 = int_to_ptr.vmem [resolvable:$true] %s504_s28  ;;  %s507_s9 = int_to_ptr.hbm [resolvable:$true] %s506_s9 }
  0x29   : > { %v316_v34 = vpack.c.bf16 %v308_v21, %v306_v20  ;;  %v613_v36 = vor.u32 %v645_v25, %v612_v24  ;;  %v617_v37 = vor.u32 %v644_v26, %v614_v31  ;;  %v317_v40 = vpack.c.bf16 %v309_v27, %v307_v22  ;;  %396 = vmatpush.bf16.msra.mxu2 %v621_v16  ;;  %v268_v48 = vld [vmem:[%s949_s10] sm:$0xff]  ;;  %v269_v49 = vld [vmem:[%s949_s10 + $0x8] sm:$0xff]  ;;  %s768_s27 = sshra.s32 %s507_s9, 4  ;;  %s774_s11 = scalar_lea.hbm %s1032_s5, 16  ;;  %s769_s27 = int_to_ptr.hbm [resolvable:$true] %s768_s27 }
  0x2a   : > { %v302_v41 = vmul.f32 %v286_v28, %v286_v28  ;;  %v304_v42 = vmul.f32 %v288_v29, %v288_v29  ;;  %v303_v43 = vmul.f32 %v287_v30, %v287_v30  ;;  %409 = vmatpush.bf16.msra.mxu3 %v625_v23  ;;  %v305_v44 = vmul.f32 %v289_v35, %v289_v35  ;;  %v417_v50 = vld [vmem:[%s1030_s3] sm:$0xff]  ;;  %v606_v55 = vld [vmem:[%s949_s10 + $0x8] sm:$0xf0]  ;;  %s770_s29 = scalar_lea.hbm %s769_s27, 8  ;;  %p775_p7 = scmp.lt.s32.totalorder %s769_s27, %s1032_s5 }
  0x2b   : > { %326 = vmatpush.bf16.msra.mxu0 %v316_v34  ;;  %v282_v45 = vunpack.c.l.bf16 %v270_v32  ;;  %v284_v46 = vunpack.c.l.bf16 %v271_v33  ;;  %v283_v47 = vunpack.c.h.bf16 %v270_v32  ;;  %339 = vmatpush.bf16.msra.mxu1 %v317_v40  ;;  %v285_v52 = vunpack.c.h.bf16 %v271_v33  ;;  %v642_v54 = vld [vmem:[%s949_s10 + $0x4] sm:$0xf]  ;;  %v276_v8 = vld [vmem:[%s1028_s1] sm:$0xf]  ;;  %s491_s10 = scalar_lea.sflag [#allocation4], %s945_s26  ;;  %p771_p4 = scmp.ne.s32.totalorder %s769_s27, %s770_s29 }
  0x2c   : > { %v314_v51 = vpack.c.bf16 %v304_v42, %v302_v41  ;;  %v605_v53 = vor.u32 %v643_v39, %v604_v38  ;;  %420 = vperm.xlu0 %715, %v417_v50   ;;  %v315_v56 = vpack.c.bf16 %v305_v44, %v303_v43  ;;  %v278_v61 = vunpack.c.l.bf16 %v268_v48  ;;  %v277_v11 = vld [vmem:[%s1029_s2] sm:$0xf]  ;;  %p776_p8 = scmp.lt.s32.totalorder %s774_s11, %s770_s29 }
  0x2d   : > { %v298_v57 = vmul.f32 %v282_v45, %v282_v45  ;;  %v300_v58 = vmul.f32 %v284_v46, %v284_v46  ;;  %v299_v59 = vmul.f32 %v283_v47, %v283_v47  ;;  %397 = vmatpush.bf16.msra.mxu2 %v613_v36  ;;  %v301_v60 = vmul.f32 %v285_v52, %v285_v52  ;;  %p772_p5 = pnand %p771_p4, %p922_p9 }
  0x2e   : > { %v280_v62 = vunpack.c.l.bf16 %v269_v49  ;;  %v279_v63 = vunpack.c.h.bf16 %v268_v48  ;;  %410 = vmatpush.bf16.msra.mxu3 %v617_v37  ;;  %v609_v1 = vor.u32 %v642_v54, %v606_v55  ;;  %v281_v2 = vunpack.c.h.bf16 %v269_v49  ;;  %p777_p10 = por %p776_p8, %p775_p7 }
  0x2f   : > { %327 = vmatpush.bf16.msra.mxu0 %v314_v51  ;;  %v312_v0 = vpack.c.bf16 %v300_v58, %v298_v57  ;;  %340 = vmatpush.bf16.msra.mxu1 %v315_v56  ;;  %v313_v3 = vpack.c.bf16 %v301_v60, %v299_v59  ;;  %v294_v4 = vmul.f32 %v278_v61, %v278_v61  ;;  %v476_v55 = vlaneseq  ;;  %p773_p6 = pneg %p772_p5 }
  0x30   : > { %v296_v5 = vmul.f32 %v280_v62, %v280_v62  ;;  %v295_v6 = vmul.f32 %v279_v63, %v279_v63  ;;  %v297_v7 = vmul.f32 %v281_v2, %v281_v2 }
  0x31   : > { %398 = vmatpush.bf16.msra.mxu2 %v605_v53  ;;  %v477_v56 = vand.u32 127, %v476_v55  ;;  %p778_p13 = pnand %p777_p10, %p773_p6 }
  0x32   : > { %411 = vmatpush.bf16.msra.mxu3 %v609_v1  ;;  %v310_v9 = vpack.c.bf16 %v296_v5, %v294_v4  ;;  %v311_v10 = vpack.c.bf16 %v297_v7, %v295_v6 }
  0x33   : > { %328 = vmatpush.bf16.msra.mxu0 %v312_v0  ;;  %341 = vmatpush.bf16.msra.mxu1 %v313_v3  ;;  %v478_v60 = vadd.s32 128, %v477_v56 }
  0x34   : > { %634 = vmatmul.msk.bf16.vlgmr.msra.gmra.mxu2 %vm318_vm0, %v276_v8 }
  0x35   : > { %635 = vmatmul.msk.bf16.vlgmr.msra.gmra.mxu3 %vm318_vm0, %v276_v8  ;;  %vm483_vm1 = vcmp.lt.s32.totalorder %v478_v60, 169 }
  0x37   : > { %329 = vmatpush.bf16.msra.mxu0 %v310_v9  ;;  %342 = vmatpush.bf16.msra.mxu1 %v311_v10 }
  0x3a   : > { %600 = vmatmul.msk.bf16.vlgmr.msra.gmra.mxu0 %vm318_vm0, %v277_v11  ;;  %601 = vmatmul.msk.bf16.vlgmr.msra.gmra.mxu1 %vm318_vm0, %v277_v11 }
  0x9e   : > { %v421_v13 = vpop.permute.xlu0 %420 }
  0xb7   : > { %v331_v12 = vpop.f32.mrf.mxu0  ;;  %v344_v14 = vpop.f32.mrf.mxu1 }
  0xb8   : > { %v400_v15 = vpop.f32.mrf.mxu2  ;;  %v413_v17 = vpop.f32.mrf.mxu3 }
  0xb9   : > { %v401_v16 = vadd.f32 %v400_v15, %v331_v12  ;;  %v414_v18 = vadd.f32 %v413_v17, %v344_v14 }
  0xbb   : > { %v423_v19 = vadd.f32 %v421_v13, %v401_v16  ;;  %v424_v20 = vadd.f32 %v421_v13, %v414_v18 }
  0xbd   : > { %v425_v21 = vrot.slane %v423_v19, 4  ;;  %v431_v22 = vrot.slane %v424_v20, 4 }
  0xbf   : > { %v426_v23 = vmax.f32 %v423_v19, %v425_v21  ;;  %v333_v24 = vpop.f32.mrf.mxu0  ;;  %v432_v25 = vmax.f32 %v424_v20, %v431_v22  ;;  %v346_v26 = vpop.f32.mrf.mxu1 }
  0xc0   : > { %v402_v27 = vpop.f32.mrf.mxu2  ;;  %v415_v29 = vpop.f32.mrf.mxu3 }
  0xc1   : > { %v427_v28 = vrot.slane %v426_v23, 2  ;;  %v433_v30 = vrot.slane %v432_v25, 2 }
  0xc3   : > { %v428_v31 = vmax.f32 %v426_v23, %v427_v28  ;;  %v434_v32 = vmax.f32 %v432_v25, %v433_v30 }
  0xc5   : > { %v429_v33 = vrot.slane %v428_v31, 1  ;;  %v435_v34 = vrot.slane %v434_v32, 1 }
  0xc7   : > { %v430_v35 = vmax.f32 %v428_v31, %v429_v33  ;;  %v436_v36 = vmax.f32 %v434_v32, %v435_v34 }
  0xc9   : > { %v437_v37 = vsub.f32 %v423_v19, %v430_v35  ;;  %v438_v38 = vsub.f32 %v424_v20, %v436_v36 }
  0xcb   : > { %v439_v39 = vmul.f32 1.442695, %v437_v37  ;;  %v441_v40 = vmul.f32 1.442695, %v438_v38 }
  0xcd   : > { %716 = vpow2.f32 %v439_v39 }
  0xce   : > { %718 = vpow2.f32 %v441_v40 }
  0xd3   : > { %v717_v41 = vpop.eup %716 }
  0xd4   : > { %v719_v42 = vpop.eup %718  ;;  %v443_v43 = vrot.slane %v717_v41, 4 }
  0xd5   : > { %v449_v44 = vrot.slane %v719_v42, 4 }
  0xd6   : > { %v444_v45 = vadd.f32 %v717_v41, %v443_v43 }
  0xd7   : > { %v450_v46 = vadd.f32 %v719_v42, %v449_v44 }
  0xd8   : > { %v445_v47 = vrot.slane %v444_v45, 2 }
  0xd9   : > { %v451_v48 = vrot.slane %v450_v46, 2 }
  0xda   : > { %v446_v49 = vadd.f32 %v445_v47, %v444_v45 }
  0xdb   : > { %v452_v50 = vadd.f32 %v451_v48, %v450_v46 }
  0xdc   : > { %v447_v51 = vrot.slane %v446_v49, 1 }
  0xdd   : > { %v453_v52 = vrot.slane %v452_v50, 1 }
  0xde   : > { %v448_v53 = vadd.f32 %v447_v51, %v446_v49 }
  0xdf   : > { %v454_v54 = vadd.f32 %v453_v52, %v452_v50 }
  0xe0   : > { %720 = vlog2.f32 %v448_v53 }
  0xe1   : > { %722 = vlog2.f32 %v454_v54 }
  0xe6   : > { %v721_v57 = vpop.eup %720 }
  0xe7   : > { %v723_v58 = vpop.eup %722  ;;  %v456_v59 = vmul.f32 0.6931472, %v721_v57 }
  0xe8   : > { %v458_v61 = vmul.f32 0.6931472, %v723_v58 }
  0xe9   : > { %v459_v62 = vadd.f32 %v456_v59, %v430_v35 }
  0xea   : > { %v460_v63 = vadd.f32 %v458_v61, %v436_v36 }
  0xeb   : > { %v461_v0 = vsub.f32 0.0, %v459_v62 }
  0xec   : > { %v462_v1 = vsub.f32 0.0, %v460_v63 }
  0xee   : > { %v485_v2 = vsel %vm483_vm1, %v462_v1, 0.0 }
  0xef   : > { %v486_v3 = vadd.f32 %v485_v2, %v461_v0 }
  0xf1   : > { %487 = vadd.xlane.f32.xlu0 %v486_v3 }
 0x164   : > { %v488_v4 = vpop.xlane.xlu0 %487 }
 0x165   : > { %489 = vst [vmem:[%s263_s24] sm:$0xff] %v488_v4 }
 0x166   : > { %781 = shalt.err (!%p778_p13)
}
 0x167   : > { %652 = dma.vmem_to_hbm [thread:$0]  (%p922_p9), %s505_s28, 128, %s507_s9, %s491_s10  }
 0x168 PF: > { %s518_s26 = sand.u32 1, %s816_s18   ;;  %p659_p0 = pnand %p592_p12, %p929_p11 }
 0x169   : > { %s519_s14 = scalar_lea.sflag [#allocation4], %s518_s26 }
 0x16a   : > { %p660_p1 = pneg %p659_p0 }
 0x16c   : > { %811 = dma.done.wait (%p660_p1), %s519_s14, 128  }
 0x16d   : > { %813 = vsyncadd (%p660_p1), %s519_s14, 4294967168  ;;  %s21_s23 = sadd.s32 1, %s836_s23   ;;  %s1037_s18 = smov %s820_s19 }
 0x16e   : > { %p18_p2 = scmp.ge.s32.totalorder %s21_s23, 4   ;;  %s1038_s19 = smov %s824_s20 }
 0x16f   : > { %s1039_s20 = smov %s927_s6  ;;  %s1040_s21 = smov %s832_s22 }
 0x170   : > { %s1041_s22 = smov %s1043_s25  ;;  %20 = sbr.rel (!%p18_p2) target bundleno = 6 (0x6), region = 93 }
 0x175   :  { %525 = vsyncpa [#allocation3], 1 }
 0x176   :  { %527 = vsyncpa [#allocation3 + $0x1], 1 }
 0x177   :  { %528 = vsyncpa [#allocation4], 1 }
 0x178   :  { %530 = vsyncpa [#allocation4 + $0x1], 1 }

</bundles_post_ra>
